<compile_context>
chip_gen: v7x
topology: tpu7x:2x2x1
jax: 0.10.0
libtpu: 0.0.40
codegen_flags: <defaults>
</compile_context>

<pallas_src>
import functools

import numpy as np

import jax
import jax.numpy as jnp
from jax import lax
from jax.experimental import pallas as pl
from jax.experimental.pallas import tpu as pltpu


OUT_DTYPE = jnp.float32   # set to jnp.bfloat16 to halve output writeback if acceptable


def _round_up(x, m):
    return (x + m - 1) // m * m


def _sce_kernel(planes_ref, w_ref, shift_ref, x2_ref, o_ref, acc_ref, *, c1, ho, wo):
    """One batch element: 9-tap stride-2 conv (MXU) + folded-BN shift + SiLU + concat.

    planes_ref: (4, C1, Lp)      bf16  stride-phase planes of the padded input, flattened
                                       over a (Ho+1, Wo+1) grid (lane axis), zero padded.
    w_ref:      (9, C1, C1)      bf16  per-tap weights with the BN scale folded in.
    shift_ref:  (C1, 1)          f32   folded BN shift (beta - mean * scale).
    x2_ref:     (C2, Ho*Wo)            pass-through branch, flattened spatial.
    o_ref:      (C1+C2, Ho*Wo)         output block (flattened NCHW spatial).
    acc_ref:    (C1, Ho*(Wo+1)) f32    scratch: conv accumulator on the junk-column grid.
    """
    wj = wo + 1              # junk-grid row width (one discarded column per output row)
    hwj = ho * wj            # conv output size on the junk grid

    # 9 accumulated (C1, C1) @ (C1, HWj) matmuls; tap (dy, dx) is a constant lane-offset
    # slice of phase plane (dy % 2, dx % 2).
    for t in range(9):
        dy, dx = divmod(t, 3)
        ph = 2 * (dy % 2) + (dx % 2)
        off = (dy // 2) * wj + (dx // 2)
        contrib = jnp.dot(w_ref[t], planes_ref[ph, :, pl.ds(off, hwj)],
                          preferred_element_type=jnp.float32)
        if t == 0:
            acc_ref[...] = contrib
        else:
            acc_ref[...] += contrib

    # Folded BN shift + SiLU (sigmoid on the EUP), in f32.
    y = acc_ref[...] + shift_ref[...]
    acc_ref[...] = y * jax.nn.sigmoid(y)

    # Drop the junk column on-chip: cheap VMEM->VMEM row copies; HBM gets a clean layout.
    for r in range(ho):
        o_ref[:c1, pl.ds(r * wo, wo)] = acc_ref[:, pl.ds(r * wj, wo)].astype(o_ref.dtype)

    # Fused channel concat: x_p2 pass-through occupies channels [c1, c1 + c2).
    o_ref[c1:, :] = x2_ref[...].astype(o_ref.dtype)


def sce_forward(x_p1, x_p2, w, gamma, beta, mean, var, eps=1e-5):
    """x_p1: (B, C1, H, W) NCHW; x_p2: (B, C2, Ho, Wo) with (Ho, Wo) = stride-2 conv output."""
    B, C1, H, W = x_p1.shape
    B2, C2, Hq, Wq = x_p2.shape
    k, s, pad = 3, 2, 1
    Ho = (H + 2 * pad - k) // s + 1
    Wo = (W + 2 * pad - k) // s + 1
    assert (B2, Hq, Wq) == (B, Ho, Wo), "x_p2 must match the down-sampled spatial dims"

    HW = Ho * Wo
    HWj = Ho * (Wo + 1)                        # conv grid incl. one junk column per row
    HWp = (Ho + 1) * (Wo + 1)                  # phase-plane size
    Lp = _round_up(HWp + 1, 128)               # lane-padded plane length (max tap offset fits)
    C_total = C1 + C2

    # ---- bytes-neutral space-to-depth of the padded input into 4 stride phases ----------
    # planes[b, 2*py + px, c, r*(Wo+1) + t] = xpad[b, c, 2*r + py, 2*t + px]
    xpad = jnp.pad(x_p1, ((0, 0), (0, 0),
                          (pad, 2 * (Ho + 1) - H - pad),
                          (pad, 2 * (Wo + 1) - W - pad)))
    planes = xpad.reshape(B, C1, Ho + 1, 2, Wo + 1, 2)
    planes = planes.transpose(0, 3, 5, 1, 2, 4).reshape(B, 4, C1, HWp)
    planes = jnp.pad(planes, ((0, 0), (0, 0), (0, 0), (0, Lp - HWp))).astype(jnp.bfloat16)

    # ---- fold eval-mode BatchNorm into the weights (fold in f32, single bf16 cast) ------
    scale = gamma.astype(jnp.float32) * lax.rsqrt(var.astype(jnp.float32) + eps)      # (C1,)
    shift = (beta.astype(jnp.float32) - mean.astype(jnp.float32) * scale).reshape(C1, 1)
    w_taps = w.astype(jnp.float32) * scale[:, None, None, None]                       # (C1,C1,3,3)
    w_taps = w_taps.transpose(2, 3, 0, 1).reshape(9, C1, C1).astype(jnp.bfloat16)     # tap-major

    x2f = x_p2.reshape(B, C2, HW)              # free contiguous reshape, no cast pass

    out_isz = np.dtype(OUT_DTYPE).itemsize
    x2_isz = np.dtype(x2f.dtype).itemsize

    # ---- VMEM budget: double-buffered streamed blocks + resident weights + scratch ------
    blk_bytes = (2 * (4 * C1 * Lp * 2 + C2 * HW * x2_isz + C_total * HW * out_isz)
                 + 9 * C1 * C1 * 2 + C1 * 4 + C1 * HWj * 4)
    vmem_limit = int(min(64 << 20, max(16 << 20, 2 * blk_bytes + (2 << 20))))

    cost = pl.CostEstimate(
        flops=2 * B * 9 * C1 * C1 * HW,
        transcendentals=B * C1 * HW,
        bytes_accessed=(planes.size * 2 + w_taps.size * 2 + shift.size * 4
                        + x2f.size * x2_isz + B * C_total * HW * out_isz))

    out = pl.pallas_call(
        functools.partial(_sce_kernel, c1=C1, ho=Ho, wo=Wo),
        out_shape=jax.ShapeDtypeStruct((B, C_total, HW), OUT_DTYPE),
        grid=(B,),
        in_specs=[
            pl.BlockSpec((None, 4, C1, Lp), lambda b: (b, 0, 0, 0)),   # phase planes (1x HBM read)
            pl.BlockSpec((9, C1, C1), lambda b: (0, 0, 0)),            # folded weights (resident)
            pl.BlockSpec((C1, 1), lambda b: (0, 0)),                   # BN shift (resident)
            pl.BlockSpec((None, C2, HW), lambda b: (b, 0, 0)),         # x_p2 pass-through
        ],
        out_specs=pl.BlockSpec((None, C_total, HW), lambda b: (b, 0, 0)),
        scratch_shapes=[pltpu.VMEM((C1, HWj), jnp.float32)],
        compiler_params=pltpu.CompilerParams(
            dimension_semantics=("parallel",), vmem_limit_bytes=vmem_limit),
        cost_estimate=cost,
    )(planes, w_taps, shift, x2f)

    # Free reshape back to NCHW (channels already ordered [conv branch, x_p2]).
    return out.reshape(B, C_total, Ho, Wo)


if __name__ == "__main__":
    key = jax.random.PRNGKey(0)
    k_x1, k_x2, k_w, k_g, k_b, k_m, k_v = jax.random.split(key, 7)

    B, C1, H, W = 2, 4, 16, 16           # x_p1
    C2, Ho, Wo = 8, H // 2, W // 2       # x_p2 matches downsampled spatial dims

    x_p1 = jax.random.normal(k_x1, (B, C1, H, W), jnp.float32)
    x_p2 = jax.random.normal(k_x2, (B, C2, Ho, Wo), jnp.float32)

    # Deterministic synthetic parameters (Conv2d weight, BatchNorm2d eval-mode params).
    w = 0.1 * jax.random.normal(k_w, (C1, C1, 3, 3), jnp.float32)        # (Cout,Cin,kH,kW)
    gamma = 1.0 + 0.1 * jax.random.normal(k_g, (C1,), jnp.float32)
    beta = 0.05 * jax.random.normal(k_b, (C1,), jnp.float32)
    run_mean = 0.1 * jax.random.normal(k_m, (C1,), jnp.float32)
    run_var = 0.5 + jnp.abs(jax.random.normal(k_v, (C1,), jnp.float32))  # > 0

    out = jax.block_until_ready(sce_forward(x_p1, x_p2, w, gamma, beta, run_mean, run_var))
    assert out.shape == (B, C1 + C2, Ho, Wo), out.shape

    # Reference check (relaxed tolerance: conv operands are bf16 on the MXU).
    conv = lax.conv_general_dilated(x_p1, w, (2, 2), ((1, 1), (1, 1)),
                                    dimension_numbers=("NCHW", "OIHW", "NCHW"))
    scale = gamma * lax.rsqrt(run_var + 1e-5)
    bn = conv * scale[None, :, None, None] + (beta - run_mean * scale)[None, :, None, None]
    ref = jnp.concatenate([bn * jax.nn.sigmoid(bn), x_p2], axis=1)
    assert bool(jnp.allclose(out, ref, rtol=0.1, atol=0.1)), float(jnp.max(jnp.abs(out - ref)))

    print("KERNEL_OK")
</pallas_src>

<mosaic_0001>
module attributes {stable_mosaic.version = 11 : i64} {
  func.func @_sce_kernel(%arg0: i32, %arg1: memref<1x4x4x128xbf16, #tpu.memory_space<vmem>>, %arg2: memref<9x4x4xbf16, #tpu.memory_space<vmem>>, %arg3: memref<4x1xf32, #tpu.memory_space<vmem>>, %arg4: memref<1x8x64xf32, #tpu.memory_space<vmem>>, %arg5: memref<1x12x64xf32, #tpu.memory_space<vmem>>, %arg6: memref<4x72xf32, #tpu.memory_space<vmem>>) attributes {dimension_semantics = [#tpu.dimension_semantics<parallel>], iteration_bounds = array<i64: 2>, scalar_prefetch = 0 : i64, scratch_operands = 1 : i64, tpu.core_type = #tpu.core_type<tc>, window_params = [{transform_indices = @transform_0, window_bounds = array<i64: 1, 4, 4, 128>}, {pipeline_mode = #tpu.pipeline_mode<synchronous>, transform_indices = @transform_1, window_bounds = array<i64: 9, 4, 4>}, {pipeline_mode = #tpu.pipeline_mode<synchronous>, transform_indices = @transform_2, window_bounds = array<i64: 4, 1>}, {transform_indices = @transform_3, window_bounds = array<i64: 1, 8, 64>}, {transform_indices = @transform_4, window_bounds = array<i64: 1, 12, 64>}]} {
    %c0 = arith.constant 0 : index
    %c0_0 = arith.constant 0 : index
    %c0_1 = arith.constant 0 : index
    %0 = vector.load %arg2[%c0, %c0_0, %c0_1] : memref<9x4x4xbf16, #tpu.memory_space<vmem>>, vector<1x4x4xbf16>
    %1 = vector.shape_cast %0 : vector<1x4x4xbf16> to vector<4x4xbf16>
    %c0_2 = arith.constant 0 : index
    %c0_3 = arith.constant 0 : index
    %c0_4 = arith.constant 0 : index
    %c0_5 = arith.constant 0 : index
    %2 = vector.load %arg1[%c0_2, %c0_3, %c0_4, %c0_5] : memref<1x4x4x128xbf16, #tpu.memory_space<vmem>>, vector<1x1x4x72xbf16>
    %3 = vector.shape_cast %2 : vector<1x1x4x72xbf16> to vector<4x72xbf16>
    %cst = arith.constant dense<0.000000e+00> : vector<4x72xf32>
    %4 = tpu.matmul %1, %3, %cst {dimension_numbers = #tpu.dot_dimension_numbers<[1], [0], [0], [1], [0, 0, 1, 1], [], []>} : vector<4x4xbf16>, vector<4x72xbf16>, vector<4x72xf32> -> vector<4x72xf32>
    %c0_6 = arith.constant 0 : index
    %c0_7 = arith.constant 0 : index
    %5 = vector.load %arg6[%c0_6, %c0_7] : memref<4x72xf32, #tpu.memory_space<vmem>>, vector<4x72xf32>
    tpu.vector_store %arg6[%c0_6, %c0_7], %4 {strides = array<i32>} : memref<4x72xf32, #tpu.memory_space<vmem>>, vector<4x72xf32>,
    %c1 = arith.constant 1 : index
    %c0_8 = arith.constant 0 : index
    %c0_9 = arith.constant 0 : index
    %6 = vector.load %arg2[%c1, %c0_8, %c0_9] : memref<9x4x4xbf16, #tpu.memory_space<vmem>>, vector<1x4x4xbf16>
    %7 = vector.shape_cast %6 : vector<1x4x4xbf16> to vector<4x4xbf16>
    %c0_10 = arith.constant 0 : index
    %c1_11 = arith.constant 1 : index
    %c0_12 = arith.constant 0 : index
    %c0_13 = arith.constant 0 : index
    %8 = vector.load %arg1[%c0_10, %c1_11, %c0_12, %c0_13] : memref<1x4x4x128xbf16, #tpu.memory_space<vmem>>, vector<1x1x4x72xbf16>
    %9 = vector.shape_cast %8 : vector<1x1x4x72xbf16> to vector<4x72xbf16>
    %cst_14 = arith.constant dense<0.000000e+00> : vector<4x72xf32>
    %10 = tpu.matmul %7, %9, %cst_14 {dimension_numbers = #tpu.dot_dimension_numbers<[1], [0], [0], [1], [0, 0, 1, 1], [], []>} : vector<4x4xbf16>, vector<4x72xbf16>, vector<4x72xf32> -> vector<4x72xf32>
    %c0_15 = arith.constant 0 : index
    %c0_16 = arith.constant 0 : index
    %11 = vector.load %arg6[%c0_15, %c0_16] : memref<4x72xf32, #tpu.memory_space<vmem>>, vector<4x72xf32>
    %12 = arith.addf %11, %10 : vector<4x72xf32>
    %c0_17 = arith.constant 0 : index
    %c0_18 = arith.constant 0 : index
    %13 = vector.load %arg6[%c0_17, %c0_18] : memref<4x72xf32, #tpu.memory_space<vmem>>, vector<4x72xf32>
    tpu.vector_store %arg6[%c0_17, %c0_18], %12 {strides = array<i32>} : memref<4x72xf32, #tpu.memory_space<vmem>>, vector<4x72xf32>,
    %c2 = arith.constant 2 : index
    %c0_19 = arith.constant 0 : index
    %c0_20 = arith.constant 0 : index
    %14 = vector.load %arg2[%c2, %c0_19, %c0_20] : memref<9x4x4xbf16, #tpu.memory_space<vmem>>, vector<1x4x4xbf16>
    %15 = vector.shape_cast %14 : vector<1x4x4xbf16> to vector<4x4xbf16>
    %c0_21 = arith.constant 0 : index
    %c0_22 = arith.constant 0 : index
    %c0_23 = arith.constant 0 : index
    %c1_24 = arith.constant 1 : index
    %16 = vector.load %arg1[%c0_21, %c0_22, %c0_23, %c1_24] : memref<1x4x4x128xbf16, #tpu.memory_space<vmem>>, vector<1x1x4x72xbf16>
    %17 = vector.shape_cast %16 : vector<1x1x4x72xbf16> to vector<4x72xbf16>
    %cst_25 = arith.constant dense<0.000000e+00> : vector<4x72xf32>
    %18 = tpu.matmul %15, %17, %cst_25 {dimension_numbers = #tpu.dot_dimension_numbers<[1], [0], [0], [1], [0, 0, 1, 1], [], []>} : vector<4x4xbf16>, vector<4x72xbf16>, vector<4x72xf32> -> vector<4x72xf32>
    %c0_26 = arith.constant 0 : index
    %c0_27 = arith.constant 0 : index
    %19 = vector.load %arg6[%c0_26, %c0_27] : memref<4x72xf32, #tpu.memory_space<vmem>>, vector<4x72xf32>
    %20 = arith.addf %19, %18 : vector<4x72xf32>
    %c0_28 = arith.constant 0 : index
    %c0_29 = arith.constant 0 : index
    %21 = vector.load %arg6[%c0_28, %c0_29] : memref<4x72xf32, #tpu.memory_space<vmem>>, vector<4x72xf32>
    tpu.vector_store %arg6[%c0_28, %c0_29], %20 {strides = array<i32>} : memref<4x72xf32, #tpu.memory_space<vmem>>, vector<4x72xf32>,
    %c3 = arith.constant 3 : index
    %c0_30 = arith.constant 0 : index
    %c0_31 = arith.constant 0 : index
    %22 = vector.load %arg2[%c3, %c0_30, %c0_31] : memref<9x4x4xbf16, #tpu.memory_space<vmem>>, vector<1x4x4xbf16>
    %23 = vector.shape_cast %22 : vector<1x4x4xbf16> to vector<4x4xbf16>
    %c0_32 = arith.constant 0 : index
    %c2_33 = arith.constant 2 : index
    %c0_34 = arith.constant 0 : index
    %c0_35 = arith.constant 0 : index
    %24 = vector.load %arg1[%c0_32, %c2_33, %c0_34, %c0_35] : memref<1x4x4x128xbf16, #tpu.memory_space<vmem>>, vector<1x1x4x72xbf16>
    %25 = vector.shape_cast %24 : vector<1x1x4x72xbf16> to vector<4x72xbf16>
    %cst_36 = arith.constant dense<0.000000e+00> : vector<4x72xf32>
    %26 = tpu.matmul %23, %25, %cst_36 {dimension_numbers = #tpu.dot_dimension_numbers<[1], [0], [0], [1], [0, 0, 1, 1], [], []>} : vector<4x4xbf16>, vector<4x72xbf16>, vector<4x72xf32> -> vector<4x72xf32>
    %c0_37 = arith.constant 0 : index
    %c0_38 = arith.constant 0 : index
    %27 = vector.load %arg6[%c0_37, %c0_38] : memref<4x72xf32, #tpu.memory_space<vmem>>, vector<4x72xf32>
    %28 = arith.addf %27, %26 : vector<4x72xf32>
    %c0_39 = arith.constant 0 : index
    %c0_40 = arith.constant 0 : index
    %29 = vector.load %arg6[%c0_39, %c0_40] : memref<4x72xf32, #tpu.memory_space<vmem>>, vector<4x72xf32>
    tpu.vector_store %arg6[%c0_39, %c0_40], %28 {strides = array<i32>} : memref<4x72xf32, #tpu.memory_space<vmem>>, vector<4x72xf32>,
    %c4 = arith.constant 4 : index
    %c0_41 = arith.constant 0 : index
    %c0_42 = arith.constant 0 : index
    %30 = vector.load %arg2[%c4, %c0_41, %c0_42] : memref<9x4x4xbf16, #tpu.memory_space<vmem>>, vector<1x4x4xbf16>
    %31 = vector.shape_cast %30 : vector<1x4x4xbf16> to vector<4x4xbf16>
    %c0_43 = arith.constant 0 : index
    %c3_44 = arith.constant 3 : index
    %c0_45 = arith.constant 0 : index
    %c0_46 = arith.constant 0 : index
    %32 = vector.load %arg1[%c0_43, %c3_44, %c0_45, %c0_46] : memref<1x4x4x128xbf16, #tpu.memory_space<vmem>>, vector<1x1x4x72xbf16>
    %33 = vector.shape_cast %32 : vector<1x1x4x72xbf16> to vector<4x72xbf16>
    %cst_47 = arith.constant dense<0.000000e+00> : vector<4x72xf32>
    %34 = tpu.matmul %31, %33, %cst_47 {dimension_numbers = #tpu.dot_dimension_numbers<[1], [0], [0], [1], [0, 0, 1, 1], [], []>} : vector<4x4xbf16>, vector<4x72xbf16>, vector<4x72xf32> -> vector<4x72xf32>
    %c0_48 = arith.constant 0 : index
    %c0_49 = arith.constant 0 : index
    %35 = vector.load %arg6[%c0_48, %c0_49] : memref<4x72xf32, #tpu.memory_space<vmem>>, vector<4x72xf32>
    %36 = arith.addf %35, %34 : vector<4x72xf32>
    %c0_50 = arith.constant 0 : index
    %c0_51 = arith.constant 0 : index
    %37 = vector.load %arg6[%c0_50, %c0_51] : memref<4x72xf32, #tpu.memory_space<vmem>>, vector<4x72xf32>
    tpu.vector_store %arg6[%c0_50, %c0_51], %36 {strides = array<i32>} : memref<4x72xf32, #tpu.memory_space<vmem>>, vector<4x72xf32>,
    %c5 = arith.constant 5 : index
    %c0_52 = arith.constant 0 : index
    %c0_53 = arith.constant 0 : index
    %38 = vector.load %arg2[%c5, %c0_52, %c0_53] : memref<9x4x4xbf16, #tpu.memory_space<vmem>>, vector<1x4x4xbf16>
    %39 = vector.shape_cast %38 : vector<1x4x4xbf16> to vector<4x4xbf16>
    %c0_54 = arith.constant 0 : index
    %c2_55 = arith.constant 2 : index
    %c0_56 = arith.constant 0 : index
    %c1_57 = arith.constant 1 : index
    %40 = vector.load %arg1[%c0_54, %c2_55, %c0_56, %c1_57] : memref<1x4x4x128xbf16, #tpu.memory_space<vmem>>, vector<1x1x4x72xbf16>
    %41 = vector.shape_cast %40 : vector<1x1x4x72xbf16> to vector<4x72xbf16>
    %cst_58 = arith.constant dense<0.000000e+00> : vector<4x72xf32>
    %42 = tpu.matmul %39, %41, %cst_58 {dimension_numbers = #tpu.dot_dimension_numbers<[1], [0], [0], [1], [0, 0, 1, 1], [], []>} : vector<4x4xbf16>, vector<4x72xbf16>, vector<4x72xf32> -> vector<4x72xf32>
    %c0_59 = arith.constant 0 : index
    %c0_60 = arith.constant 0 : index
    %43 = vector.load %arg6[%c0_59, %c0_60] : memref<4x72xf32, #tpu.memory_space<vmem>>, vector<4x72xf32>
    %44 = arith.addf %43, %42 : vector<4x72xf32>
    %c0_61 = arith.constant 0 : index
    %c0_62 = arith.constant 0 : index
    %45 = vector.load %arg6[%c0_61, %c0_62] : memref<4x72xf32, #tpu.memory_space<vmem>>, vector<4x72xf32>
    tpu.vector_store %arg6[%c0_61, %c0_62], %44 {strides = array<i32>} : memref<4x72xf32, #tpu.memory_space<vmem>>, vector<4x72xf32>,
    %c6 = arith.constant 6 : index
    %c0_63 = arith.constant 0 : index
    %c0_64 = arith.constant 0 : index
    %46 = vector.load %arg2[%c6, %c0_63, %c0_64] : memref<9x4x4xbf16, #tpu.memory_space<vmem>>, vector<1x4x4xbf16>
    %47 = vector.shape_cast %46 : vector<1x4x4xbf16> to vector<4x4xbf16>
    %c0_65 = arith.constant 0 : index
    %c0_66 = arith.constant 0 : index
    %c0_67 = arith.constant 0 : index
    %c9 = arith.constant 9 : index
    %48 = vector.load %arg1[%c0_65, %c0_66, %c0_67, %c9] : memref<1x4x4x128xbf16, #tpu.memory_space<vmem>>, vector<1x1x4x72xbf16>
    %49 = vector.shape_cast %48 : vector<1x1x4x72xbf16> to vector<4x72xbf16>
    %cst_68 = arith.constant dense<0.000000e+00> : vector<4x72xf32>
    %50 = tpu.matmul %47, %49, %cst_68 {dimension_numbers = #tpu.dot_dimension_numbers<[1], [0], [0], [1], [0, 0, 1, 1], [], []>} : vector<4x4xbf16>, vector<4x72xbf16>, vector<4x72xf32> -> vector<4x72xf32>
    %c0_69 = arith.constant 0 : index
    %c0_70 = arith.constant 0 : index
    %51 = vector.load %arg6[%c0_69, %c0_70] : memref<4x72xf32, #tpu.memory_space<vmem>>, vector<4x72xf32>
    %52 = arith.addf %51, %50 : vector<4x72xf32>
    %c0_71 = arith.constant 0 : index
    %c0_72 = arith.constant 0 : index
    %53 = vector.load %arg6[%c0_71, %c0_72] : memref<4x72xf32, #tpu.memory_space<vmem>>, vector<4x72xf32>
    tpu.vector_store %arg6[%c0_71, %c0_72], %52 {strides = array<i32>} : memref<4x72xf32, #tpu.memory_space<vmem>>, vector<4x72xf32>,
    %c7 = arith.constant 7 : index
    %c0_73 = arith.constant 0 : index
    %c0_74 = arith.constant 0 : index
    %54 = vector.load %arg2[%c7, %c0_73, %c0_74] : memref<9x4x4xbf16, #tpu.memory_space<vmem>>, vector<1x4x4xbf16>
    %55 = vector.shape_cast %54 : vector<1x4x4xbf16> to vector<4x4xbf16>
    %c0_75 = arith.constant 0 : index
    %c1_76 = arith.constant 1 : index
    %c0_77 = arith.constant 0 : index
    %c9_78 = arith.constant 9 : index
    %56 = vector.load %arg1[%c0_75, %c1_76, %c0_77, %c9_78] : memref<1x4x4x128xbf16, #tpu.memory_space<vmem>>, vector<1x1x4x72xbf16>
    %57 = vector.shape_cast %56 : vector<1x1x4x72xbf16> to vector<4x72xbf16>
    %cst_79 = arith.constant dense<0.000000e+00> : vector<4x72xf32>
    %58 = tpu.matmul %55, %57, %cst_79 {dimension_numbers = #tpu.dot_dimension_numbers<[1], [0], [0], [1], [0, 0, 1, 1], [], []>} : vector<4x4xbf16>, vector<4x72xbf16>, vector<4x72xf32> -> vector<4x72xf32>
    %c0_80 = arith.constant 0 : index
    %c0_81 = arith.constant 0 : index
    %59 = vector.load %arg6[%c0_80, %c0_81] : memref<4x72xf32, #tpu.memory_space<vmem>>, vector<4x72xf32>
    %60 = arith.addf %59, %58 : vector<4x72xf32>
    %c0_82 = arith.constant 0 : index
    %c0_83 = arith.constant 0 : index
    %61 = vector.load %arg6[%c0_82, %c0_83] : memref<4x72xf32, #tpu.memory_space<vmem>>, vector<4x72xf32>
    tpu.vector_store %arg6[%c0_82, %c0_83], %60 {strides = array<i32>} : memref<4x72xf32, #tpu.memory_space<vmem>>, vector<4x72xf32>,
    %c8 = arith.constant 8 : index
    %c0_84 = arith.constant 0 : index
    %c0_85 = arith.constant 0 : index
    %62 = vector.load %arg2[%c8, %c0_84, %c0_85] : memref<9x4x4xbf16, #tpu.memory_space<vmem>>, vector<1x4x4xbf16>
    %63 = vector.shape_cast %62 : vector<1x4x4xbf16> to vector<4x4xbf16>
    %c0_86 = arith.constant 0 : index
    %c0_87 = arith.constant 0 : index
    %c0_88 = arith.constant 0 : index
    %c10 = arith.constant 10 : index
    %64 = vector.load %arg1[%c0_86, %c0_87, %c0_88, %c10] : memref<1x4x4x128xbf16, #tpu.memory_space<vmem>>, vector<1x1x4x72xbf16>
    %65 = vector.shape_cast %64 : vector<1x1x4x72xbf16> to vector<4x72xbf16>
    %cst_89 = arith.constant dense<0.000000e+00> : vector<4x72xf32>
    %66 = tpu.matmul %63, %65, %cst_89 {dimension_numbers = #tpu.dot_dimension_numbers<[1], [0], [0], [1], [0, 0, 1, 1], [], []>} : vector<4x4xbf16>, vector<4x72xbf16>, vector<4x72xf32> -> vector<4x72xf32>
    %c0_90 = arith.constant 0 : index
    %c0_91 = arith.constant 0 : index
    %67 = vector.load %arg6[%c0_90, %c0_91] : memref<4x72xf32, #tpu.memory_space<vmem>>, vector<4x72xf32>
    %68 = arith.addf %67, %66 : vector<4x72xf32>
    %c0_92 = arith.constant 0 : index
    %c0_93 = arith.constant 0 : index
    %69 = vector.load %arg6[%c0_92, %c0_93] : memref<4x72xf32, #tpu.memory_space<vmem>>, vector<4x72xf32>
    tpu.vector_store %arg6[%c0_92, %c0_93], %68 {strides = array<i32>} : memref<4x72xf32, #tpu.memory_space<vmem>>, vector<4x72xf32>,
    %c0_94 = arith.constant 0 : index
    %c0_95 = arith.constant 0 : index
    %70 = vector.load %arg6[%c0_94, %c0_95] : memref<4x72xf32, #tpu.memory_space<vmem>>, vector<4x72xf32>
    %c0_96 = arith.constant 0 : index
    %c0_97 = arith.constant 0 : index
    %71 = vector.load %arg3[%c0_96, %c0_97] : memref<4x1xf32, #tpu.memory_space<vmem>>, vector<4x1xf32>
    %72 = vector.broadcast %71 : vector<4x1xf32> to vector<4x72xf32>
    %73 = arith.addf %70, %72 : vector<4x72xf32>
    %74 = arith.negf %73 : vector<4x72xf32>
    %75 = math.exp %74 : vector<4x72xf32>
    %cst_98 = arith.constant 1.000000e+00 : f32
    %76 = vector.broadcast %cst_98 : f32 to vector<4x72xf32>
    %77 = arith.addf %76, %75 : vector<4x72xf32>
    %78 = arith.divf %76, %77 : vector<4x72xf32>
    %79 = arith.mulf %73, %78 : vector<4x72xf32>
    %c0_99 = arith.constant 0 : index
    %c0_100 = arith.constant 0 : index
    %80 = vector.load %arg6[%c0_99, %c0_100] : memref<4x72xf32, #tpu.memory_space<vmem>>, vector<4x72xf32>
    tpu.vector_store %arg6[%c0_99, %c0_100], %79 {strides = array<i32>} : memref<4x72xf32, #tpu.memory_space<vmem>>, vector<4x72xf32>,
    %c0_101 = arith.constant 0 : index
    %c0_102 = arith.constant 0 : index
    %81 = vector.load %arg6[%c0_101, %c0_102] : memref<4x72xf32, #tpu.memory_space<vmem>>, vector<4x8xf32>
    %c0_103 = arith.constant 0 : index
    %c0_104 = arith.constant 0 : index
    %c0_105 = arith.constant 0 : index
    %82 = vector.load %arg5[%c0_103, %c0_104, %c0_105] : memref<1x12x64xf32, #tpu.memory_space<vmem>>, vector<1x4x8xf32>
    %83 = vector.shape_cast %82 : vector<1x4x8xf32> to vector<4x8xf32>
    %84 = vector.shape_cast %81 : vector<4x8xf32> to vector<1x4x8xf32>
    tpu.vector_store %arg5[%c0_103, %c0_104, %c0_105], %84 {strides = array<i32>} : memref<1x12x64xf32, #tpu.memory_space<vmem>>, vector<1x4x8xf32>,
    %c0_106 = arith.constant 0 : index
    %c9_107 = arith.constant 9 : index
    %85 = vector.load %arg6[%c0_106, %c9_107] : memref<4x72xf32, #tpu.memory_space<vmem>>, vector<4x8xf32>
    %c0_108 = arith.constant 0 : index
    %c0_109 = arith.constant 0 : index
    %c8_110 = arith.constant 8 : index
    %86 = vector.load %arg5[%c0_108, %c0_109, %c8_110] : memref<1x12x64xf32, #tpu.memory_space<vmem>>, vector<1x4x8xf32>
    %87 = vector.shape_cast %86 : vector<1x4x8xf32> to vector<4x8xf32>
    %88 = vector.shape_cast %85 : vector<4x8xf32> to vector<1x4x8xf32>
    tpu.vector_store %arg5[%c0_108, %c0_109, %c8_110], %88 {strides = array<i32>} : memref<1x12x64xf32, #tpu.memory_space<vmem>>, vector<1x4x8xf32>,
    %c0_111 = arith.constant 0 : index
    %c18 = arith.constant 18 : index
    %89 = vector.load %arg6[%c0_111, %c18] : memref<4x72xf32, #tpu.memory_space<vmem>>, vector<4x8xf32>
    %c0_112 = arith.constant 0 : index
    %c0_113 = arith.constant 0 : index
    %c16 = arith.constant 16 : index
    %90 = vector.load %arg5[%c0_112, %c0_113, %c16] : memref<1x12x64xf32, #tpu.memory_space<vmem>>, vector<1x4x8xf32>
    %91 = vector.shape_cast %90 : vector<1x4x8xf32> to vector<4x8xf32>
    %92 = vector.shape_cast %89 : vector<4x8xf32> to vector<1x4x8xf32>
    tpu.vector_store %arg5[%c0_112, %c0_113, %c16], %92 {strides = array<i32>} : memref<1x12x64xf32, #tpu.memory_space<vmem>>, vector<1x4x8xf32>,
    %c0_114 = arith.constant 0 : index
    %c27 = arith.constant 27 : index
    %93 = vector.load %arg6[%c0_114, %c27] : memref<4x72xf32, #tpu.memory_space<vmem>>, vector<4x8xf32>
    %c0_115 = arith.constant 0 : index
    %c0_116 = arith.constant 0 : index
    %c24 = arith.constant 24 : index
    %94 = vector.load %arg5[%c0_115, %c0_116, %c24] : memref<1x12x64xf32, #tpu.memory_space<vmem>>, vector<1x4x8xf32>
    %95 = vector.shape_cast %94 : vector<1x4x8xf32> to vector<4x8xf32>
    %96 = vector.shape_cast %93 : vector<4x8xf32> to vector<1x4x8xf32>
    tpu.vector_store %arg5[%c0_115, %c0_116, %c24], %96 {strides = array<i32>} : memref<1x12x64xf32, #tpu.memory_space<vmem>>, vector<1x4x8xf32>,
    %c0_117 = arith.constant 0 : index
    %c36 = arith.constant 36 : index
    %97 = vector.load %arg6[%c0_117, %c36] : memref<4x72xf32, #tpu.memory_space<vmem>>, vector<4x8xf32>
    %c0_118 = arith.constant 0 : index
    %c0_119 = arith.constant 0 : index
    %c32 = arith.constant 32 : index
    %98 = vector.load %arg5[%c0_118, %c0_119, %c32] : memref<1x12x64xf32, #tpu.memory_space<vmem>>, vector<1x4x8xf32>
    %99 = vector.shape_cast %98 : vector<1x4x8xf32> to vector<4x8xf32>
    %100 = vector.shape_cast %97 : vector<4x8xf32> to vector<1x4x8xf32>
    tpu.vector_store %arg5[%c0_118, %c0_119, %c32], %100 {strides = array<i32>} : memref<1x12x64xf32, #tpu.memory_space<vmem>>, vector<1x4x8xf32>,
    %c0_120 = arith.constant 0 : index
    %c45 = arith.constant 45 : index
    %101 = vector.load %arg6[%c0_120, %c45] : memref<4x72xf32, #tpu.memory_space<vmem>>, vector<4x8xf32>
    %c0_121 = arith.constant 0 : index
    %c0_122 = arith.constant 0 : index
    %c40 = arith.constant 40 : index
    %102 = vector.load %arg5[%c0_121, %c0_122, %c40] : memref<1x12x64xf32, #tpu.memory_space<vmem>>, vector<1x4x8xf32>
    %103 = vector.shape_cast %102 : vector<1x4x8xf32> to vector<4x8xf32>
    %104 = vector.shape_cast %101 : vector<4x8xf32> to vector<1x4x8xf32>
    tpu.vector_store %arg5[%c0_121, %c0_122, %c40], %104 {strides = array<i32>} : memref<1x12x64xf32, #tpu.memory_space<vmem>>, vector<1x4x8xf32>,
    %c0_123 = arith.constant 0 : index
    %c54 = arith.constant 54 : index
    %105 = vector.load %arg6[%c0_123, %c54] : memref<4x72xf32, #tpu.memory_space<vmem>>, vector<4x8xf32>
    %c0_124 = arith.constant 0 : index
    %c0_125 = arith.constant 0 : index
    %c48 = arith.constant 48 : index
    %106 = vector.load %arg5[%c0_124, %c0_125, %c48] : memref<1x12x64xf32, #tpu.memory_space<vmem>>, vector<1x4x8xf32>
    %107 = vector.shape_cast %106 : vector<1x4x8xf32> to vector<4x8xf32>
    %108 = vector.shape_cast %105 : vector<4x8xf32> to vector<1x4x8xf32>
    tpu.vector_store %arg5[%c0_124, %c0_125, %c48], %108 {strides = array<i32>} : memref<1x12x64xf32, #tpu.memory_space<vmem>>, vector<1x4x8xf32>,
    %c0_126 = arith.constant 0 : index
    %c63 = arith.constant 63 : index
    %109 = vector.load %arg6[%c0_126, %c63] : memref<4x72xf32, #tpu.memory_space<vmem>>, vector<4x8xf32>
    %c0_127 = arith.constant 0 : index
    %c0_128 = arith.constant 0 : index
    %c56 = arith.constant 56 : index
    %110 = vector.load %arg5[%c0_127, %c0_128, %c56] : memref<1x12x64xf32, #tpu.memory_space<vmem>>, vector<1x4x8xf32>
    %111 = vector.shape_cast %110 : vector<1x4x8xf32> to vector<4x8xf32>
    %112 = vector.shape_cast %109 : vector<4x8xf32> to vector<1x4x8xf32>
    tpu.vector_store %arg5[%c0_127, %c0_128, %c56], %112 {strides = array<i32>} : memref<1x12x64xf32, #tpu.memory_space<vmem>>, vector<1x4x8xf32>,
    %c0_129 = arith.constant 0 : index
    %c0_130 = arith.constant 0 : index
    %c0_131 = arith.constant 0 : index
    %113 = vector.load %arg4[%c0_129, %c0_130, %c0_131] : memref<1x8x64xf32, #tpu.memory_space<vmem>>, vector<1x8x64xf32>
    %114 = vector.shape_cast %113 : vector<1x8x64xf32> to vector<8x64xf32>
    %c0_132 = arith.constant 0 : index
    %c4_133 = arith.constant 4 : index
    %c0_134 = arith.constant 0 : index
    %115 = vector.load %arg5[%c0_132, %c4_133, %c0_134] : memref<1x12x64xf32, #tpu.memory_space<vmem>>, vector<1x8x64xf32>
    %116 = vector.shape_cast %115 : vector<1x8x64xf32> to vector<8x64xf32>
    %117 = vector.shape_cast %114 : vector<8x64xf32> to vector<1x8x64xf32>
    tpu.vector_store %arg5[%c0_132, %c4_133, %c0_134], %117 {strides = array<i32>} : memref<1x12x64xf32, #tpu.memory_space<vmem>>, vector<1x8x64xf32>,
    return
  }
  func.func @transform_0(%arg0: i32) -> (i32, i32, i32, i32) {
    %c0_i32 = arith.constant 0 : i32
    %c0_i32_0 = arith.constant 0 : i32
    %c0_i32_1 = arith.constant 0 : i32
    %c0_i32_2 = arith.constant 0 : i32
    return %arg0, %c0_i32, %c0_i32_0, %c0_i32_1 : i32, i32, i32, i32
  }
  func.func @transform_1(%arg0: i32) -> (i32, i32, i32) {
    %c0_i32 = arith.constant 0 : i32
    %c0_i32_0 = arith.constant 0 : i32
    %c0_i32_1 = arith.constant 0 : i32
    %c0_i32_2 = arith.constant 0 : i32
    return %c0_i32, %c0_i32_0, %c0_i32_1 : i32, i32, i32
  }
  func.func @transform_2(%arg0: i32) -> (i32, i32) {
    %c0_i32 = arith.constant 0 : i32
    %c0_i32_0 = arith.constant 0 : i32
    %c0_i32_1 = arith.constant 0 : i32
    return %c0_i32, %c0_i32_0 : i32, i32
  }
  func.func @transform_3(%arg0: i32) -> (i32, i32, i32) {
    %c0_i32 = arith.constant 0 : i32
    %c0_i32_0 = arith.constant 0 : i32
    %c0_i32_1 = arith.constant 0 : i32
    return %arg0, %c0_i32, %c0_i32_0 : i32, i32, i32
  }
  func.func @transform_4(%arg0: i32) -> (i32, i32, i32) {
    %c0_i32 = arith.constant 0 : i32
    %c0_i32_0 = arith.constant 0 : i32
    %c0_i32_1 = arith.constant 0 : i32
    return %arg0, %c0_i32, %c0_i32_0 : i32, i32, i32
  }
}

</mosaic_0001>

<bundles_post_ra>
// kernel: tpu_custom_call.1
= control target key start
LH: loop header
LB: loop body
LE: loop exit
PB: predicated region body
PF: predicated region fallthrough
CT: control target
= control target key end

     0   :  { %s1060_s15 = smov 0   ;;  %s1196_s0 = inlined_call_operand.vmem [shape: bf16[2,4,4,128], index: 0, kind: input, shape index: {}]   ;;  %s1197_s1 = inlined_call_operand.vmem [shape: bf16[9,4,4], index: 1, kind: input, shape index: {}]   ;;  %s1198_s2 = inlined_call_operand.vmem [shape: f32[4,1], index: 2, kind: input, shape index: {}]   ;;  %s1199_s3 = inlined_call_operand.vmem [shape: f32[2,8,64], index: 3, kind: input, shape index: {}]   ;;  %s1200_s4 = inlined_call_operand.vmem [shape: f32[2,12,64], index: 4, kind: output, shape index: {}]  }
   0x1 LB: > { %s875_s16 = sadd.s32 4294967295, %s1021_s15   ;;  %p879_p0 = scmp.ge.s32.totalorder %s1021_s15, 1  ;;  %s1021_s15 = sphi %s1060_s15, %s14_s15  }
   0x2   : > { %p171_p1 = scmp.lt.s32.totalorder %s1021_s15, 3 }
   0x4   : > { %p172_p2 = pnand %p879_p0, %p171_p1 }
   0x5   : > { %p201_p3 = scmp.lt.s32.totalorder (!%p172_p2), %s875_s16, 1  ;;  %v1023_v0 = vmov (!%p172_p2), 0.0   ;;  %vm1024_vm0 = vmmov (!%p172_p2), 0   ;;  %vm222_vm1 = vcmask (!%p172_p2), 1041408   ;;  %s1025_s21 = smov (!%p172_p2), 127   ;;  %vm218_vm2 = vcmask (!%p172_p2), 31744  }
   0x6   : > { %175 = sbr.rel (%p172_p2) target bundleno = 585 (0x249), region = 36  ;;  %935 = vmatprep.subr.bf16.mxu0 (!%p172_p2), %v1023_v0  ;;  %937 = vmatprep.mubr.msk.bf16.mxu0 (!%p172_p2), %vm1024_vm0, %v1023_v0  ;;  %s1026_s22 = smov (!%p172_p2), 119   ;;  %v216_v6 = vld [vmem:[%s1197_s1] sm:$0x3] (!%p172_p2)  ;;  %v886_v10 = vld [vmem:[%s1197_s1 + $0x2] sm:$0x3] (!%p172_p2) }
   0x7   : > { %941 = vmatprep.subr.bf16.mxu1 (!%p172_p2), %v1023_v0  ;;  %943 = vmatprep.mubr.msk.bf16.mxu1 (!%p172_p2), %vm1024_vm0, %v1023_v0  ;;  %s1027_s27 = smov (!%p172_p2), 118   ;;  %v892_v12 = vld [vmem:[%s1197_s1 + $0x6] sm:$0x3] (!%p172_p2)  ;;  %v738_v13 = vld [vmem:[%s1198_s2] sm:$0xf] (!%p172_p2)  ;;  %v1028_v14 = vmov (!%p172_p2), 0  }
   0x8   : > { %1009 = vset.pattern.permute.xlu1 (!%p172_p2), %v1028_v14  ;;  %1010 = vset.pattern.permute.xlu0 (!%p172_p2), %v1028_v14  ;;  %v889_v19 = vld [vmem:[%s1197_s1 + $0x4] sm:$0x3] (!%p172_p2)  ;;  %v898_v24 = vld [vmem:[%s1197_s1 + $0xa] sm:$0x3] (!%p172_p2)  ;;  %v895_v26 = vld [vmem:[%s1197_s1 + $0x8] sm:$0x3] (!%p172_p2) }
   0x9   : > { %v905_v28 = vld [vmem:[%s1197_s1 + $0xe] sm:$0x3] (!%p172_p2)  ;;  %v902_v30 = vld [vmem:[%s1197_s1 + $0xc] sm:$0x3] (!%p172_p2)  ;;  %v909_v32 = vld [vmem:[%s1197_s1 + $0x10] sm:$0x3] (!%p172_p2) }
   0xa   : > { %vm266_vm3 = vcmask (!%p172_p2), 584704   ;;  %vm806_vm4 = vcmask (!%p172_p2), 523264   ;;  %vm754_vm5 = vcmask (!%p172_p2), 60416   ;;  %s1029_s29 = smov (!%p172_p2), 126   ;;  %s1032_s30 = smov (!%p172_p2), 122   ;;  %vm761_vm6 = vcmask (!%p172_p2), 126016  }
   0xb   : > { %s1033_s5 = smov (!%p172_p2), 123   ;;  %vm768_vm7 = vcmask (!%p172_p2), 191616   ;;  %vm775_vm8 = vcmask (!%p172_p2), 257216   ;;  %vm782_vm9 = vcmask (!%p172_p2), 322816   ;;  %vm789_vm10 = vcmask (!%p172_p2), 388416  }
   0xc   : > { %vm796_vm11 = vcmask (!%p172_p2), 454016   ;;  %vm803_vm12 = vcmask (!%p172_p2), 519616  }
   0xd   : > { %s1202_s16 = smov (!%p201_p3, %s875_s16), 1 }
   0xe   : > { %s915_s17 = sshll.u32 %s1202_s16, 3  ;;  %s916_s25 = sshll.u32 %s1202_s16, 4 }
   0xf   : > { %s1082_s20 = scalar_lea.vmem %s1196_s0, %s915_s17  ;;  %s209_s24 = scalar_lea.vmem %s1199_s3, %s915_s17 }
  0x10   : > { %v890_v1 = vld.sshfl [vmem:[%s1082_s20] sm:$0x3 pattern:$0x76325410]  ;;  %v887_v7 = vld [vmem:[%s1082_s20 + $0x2] sm:$0x3]  ;;  %s1180_s28 = scalar_lea.vmem %s1200_s4, %s916_s25 }
  0x11   : > { %332 = vrot.lane.b32.xlu0 %v890_v1, %s1025_s21  ;;  %v900_v2 = vld.sshfl [vmem:[%s1082_s20 + $0x4] sm:$0x3 pattern:$0x76325410]  ;;  %562 = vrot.lane.b32.xlu1 %v890_v1, %s1026_s22  ;;  %v217_v3 = vld [vmem:[%s1082_s20] sm:$0x3] }
  0x12   : > { %v907_v4 = vld.sshfl [vmem:[%s1082_s20 + $0x2] sm:$0x3 pattern:$0x76325410]  ;;  %v224_v5 = vsel %vm222_vm1, %v217_v3, 0  ;;  %v276_v8 = vsel %vm222_vm1, %v887_v7, 0 }
  0x13   : > { %936 = vmatpush3.bf16.msra.mxu0 %v224_v5  ;;  %v893_v9 = vld [vmem:[%s1082_s20 + $0x4] sm:$0x3]  ;;  %942 = vmatpush3.bf16.msra.mxu1 %v276_v8  ;;  %v896_v16 = vld [vmem:[%s1082_s20 + $0x6] sm:$0x3]  ;;  %s1030_s16 = smov 124   ;;  %s1031_s17 = smov 125  }
  0x14   : > { %947 = vmatprep.subr.bf16.mxu0 %v1023_v0  ;;  %953 = vmatprep.subr.bf16.mxu1 %v1023_v0  ;;  %v391_v11 = vsel %vm222_vm1, %v893_v9, 0  ;;  %v444_v20 = vsel %vm222_vm1, %v896_v16, 0 }
  0x15   : > { %500 = vrot.lane.b32.xlu0 %v900_v2, %s1025_s21  ;;  %624 = vrot.lane.b32.xlu1 %v907_v4, %s1026_s22 }
  0x16   : > { %938 = vmatmul.mubr.msk.bf16.vlgmr.msra.gmra.mrb[0].mxu0 %vm218_vm2, %v216_v6  ;;  %944 = vmatmul.mubr.msk.bf16.vlgmr.msra.gmra.mrb[0].mxu1 %vm218_vm2, %v886_v10 }
  0x17   : > { %949 = vmatprep.mubr.msk.bf16.mxu0 %vm1024_vm0, %v1023_v0  ;;  %954 = vmatpush3.bf16.msra.mxu1 %v391_v11 }
  0x18   : > { %955 = vmatprep.mubr.msk.bf16.mxu1 %vm1024_vm0, %v1023_v0  ;;  %965 = vmatprep.subr.bf16.mxu1 %v1023_v0 }
  0x19   : > { %686 = vrot.lane.b32.xlu0 %v890_v1, %s1027_s27  ;;  %741 = vperm.xlu1 %1009, %v738_v13  }
  0x1e   : > { %956 = vmatmul.mubr.msk.bf16.vlgmr.msra.gmra.mrb[4].mxu1 %vm218_vm2, %v892_v12 }
  0x1f   : > { %967 = vmatprep.mubr.msk.bf16.mxu1 %vm1024_vm0, %v1023_v0 }
  0x83   : > { %v333_v15 = vpop.permute.xlu0 %332  ;;  %v563_v18 = vpop.permute.xlu1 %562 }
  0x84   : > { %v338_v17 = vsel %vm222_vm1, %v333_v15, 0  ;;  %v568_v27 = vsel %vm222_vm1, %v563_v18, 0 }
  0x85   : > { %948 = vmatpush3.bf16.msra.mxu0 %v338_v17 }
  0x86   : > { %959 = vmatprep.subr.bf16.mxu0 %v1023_v0 }
  0x87   : > { %v501_v21 = vpop.permute.xlu0 %500  ;;  %v625_v23 = vpop.permute.xlu1 %624 }
  0x88   : > { %950 = vmatmul.mubr.msk.bf16.vlgmr.msra.gmra.mrb[4].mxu0 %vm218_vm2, %v889_v19  ;;  %v506_v22 = vsel %vm222_vm1, %v501_v21, 0  ;;  %v630_v25 = vsel %vm222_vm1, %v625_v23, 0 }
  0x89   : > { %960 = vmatpush3.bf16.msra.mxu0 %v444_v20  ;;  %961 = vmatprep.mubr.msk.bf16.mxu0 %vm1024_vm0, %v1023_v0 }
  0x8a   : > { %966 = vmatpush3.bf16.msra.mxu1 %v506_v22  ;;  %971 = vmatprep.subr.bf16.mxu0 %v1023_v0 }
  0x8b   : > { %977 = vmatprep.subr.bf16.mxu1 %v1023_v0  ;;  %v687_v29 = vpop.permute.xlu0 %686 }
  0x8c   : > { %v692_v31 = vsel %vm222_vm1, %v687_v29, 0 }
  0x8d   : > { %968 = vmatmul.mubr.msk.bf16.vlgmr.msra.gmra.mrb[8].mxu1 %vm218_vm2, %v898_v24 }
  0x8e   : > { %978 = vmatpush3.bf16.msra.mxu1 %v630_v25  ;;  %979 = vmatprep.mubr.msk.bf16.mxu1 %vm1024_vm0, %v1023_v0 }
  0x90   : > { %962 = vmatmul.mubr.msk.bf16.vlgmr.msra.gmra.mrb[8].mxu0 %vm218_vm2, %v895_v26 }
  0x91   : > { %972 = vmatpush3.bf16.msra.mxu0 %v568_v27  ;;  %973 = vmatprep.mubr.msk.bf16.mxu0 %vm1024_vm0, %v1023_v0  ;;  %v805_v27 = vld [vmem:[%s209_s24] sm:$0xff] }
  0x92   : > { %983 = vmatprep.subr.bf16.mxu0 %v1023_v0  ;;  %807 = vst.msk [vmem:[%s1180_s28 + $0x4] sm:$0xff] %vm806_vm4, %v805_v27 }
  0x95   : > { %980 = vmatmul.mubr.msk.bf16.vlgmr.msra.gmra.mrb[12].mxu1 %vm218_vm2, %v905_v28 }
  0x98   : > { %974 = vmatmul.mubr.msk.bf16.vlgmr.msra.gmra.mrb[12].mxu0 %vm218_vm2, %v902_v30  ;;  %v742_v21 = vpop.permute.xlu1 %741 }
  0x99   : > { %984 = vmatpush3.bf16.msra.mxu0 %v692_v31  ;;  %985 = vmatprep.mubr.msk.bf16.mxu0 %vm1024_vm0, %v1023_v0 }
  0xa0   : > { %986 = vmatmul.mubr.msk.bf16.vlgmr.msra.gmra.mrb[16].mxu0 %vm218_vm2, %v909_v32 }
  0xe9   : > { %v260_v33 = vpop.f32.mrb[0].mxu0  ;;  %v312_v37 = vpop.f32.mrb[0].mxu1 }
  0xea   : > { %267 = vst.msk [vmem:[#allocation2] sm:$0xf] %vm266_vm3, %v260_v33  ;;  %v939_v34 = vpop.f32.mrb[1].mxu0  ;;  %v945_v38 = vpop.f32.mrb[1].mxu1 }
  0xeb   : > { %v263_v35 = vpop.f32.mrb[2].mxu0  ;;  %v315_v39 = vpop.f32.mrb[2].mxu1 }
  0xec   : > { %v940_v36 = vpop.f32.mrb[3].mxu0  ;;  %v946_v40 = vpop.f32.mrb[3].mxu1 }
  0xf1   : > { %v318_v41 = vld [vmem:[#allocation2] sm:$0xf]  ;;  %v427_v43 = vpop.f32.mrb[4].mxu1 }
  0xf2   : > { %v319_v42 = vadd.f32 %v318_v41, %v312_v37  ;;  %v957_v44 = vpop.f32.mrb[5].mxu1 }
  0xf3   : > { %v430_v45 = vpop.f32.mrb[6].mxu1 }
  0xf4   : > { %320 = vst.msk [vmem:[#allocation2] sm:$0xf] %vm266_vm3, %v319_v42  ;;  %v958_v46 = vpop.f32.mrb[7].mxu1 }
  0xfb   : > { %v380_v47 = vld [vmem:[#allocation2] sm:$0xf] }
 0x15b   : > { %v374_v48 = vpop.f32.mrb[4].mxu0 }
 0x15c   : > { %v381_v49 = vadd.f32 %v380_v47, %v374_v48  ;;  %v951_v50 = vpop.f32.mrb[5].mxu0 }
 0x15d   : > { %v377_v51 = vpop.f32.mrb[6].mxu0 }
 0x15e   : > { %382 = vst.msk [vmem:[#allocation2] sm:$0xf] %vm266_vm3, %v381_v49  ;;  %v952_v52 = vpop.f32.mrb[7].mxu0 }
 0x160   : > { %v542_v53 = vpop.f32.mrb[8].mxu1 }
 0x161   : > { %v969_v54 = vpop.f32.mrb[9].mxu1 }
 0x162   : > { %v545_v55 = vpop.f32.mrb[10].mxu1 }
 0x163   : > { %v480_v56 = vpop.f32.mrb[8].mxu0  ;;  %v970_v57 = vpop.f32.mrb[11].mxu1 }
 0x164   : > { %v963_v58 = vpop.f32.mrb[9].mxu0 }
 0x165   : > { %v433_v59 = vld [vmem:[#allocation2] sm:$0xf]  ;;  %v483_v60 = vpop.f32.mrb[10].mxu0 }
 0x166   : > { %v434_v61 = vadd.f32 %v433_v59, %v427_v43  ;;  %v964_v62 = vpop.f32.mrb[11].mxu0 }
 0x168   : > { %435 = vst.msk [vmem:[#allocation2] sm:$0xf] %vm266_vm3, %v434_v61  ;;  %v666_v63 = vpop.f32.mrb[12].mxu1 }
 0x169   : > { %v981_v0 = vpop.f32.mrb[13].mxu1 }
 0x16a   : > { %v669_v1 = vpop.f32.mrb[14].mxu1 }
 0x16b   : > { %v604_v2 = vpop.f32.mrb[12].mxu0  ;;  %v982_v3 = vpop.f32.mrb[15].mxu1 }
 0x16c   : > { %v975_v4 = vpop.f32.mrb[13].mxu0 }
 0x16d   : > { %v607_v5 = vpop.f32.mrb[14].mxu0 }
 0x16e   : > { %v976_v6 = vpop.f32.mrb[15].mxu0 }
 0x16f   : > { %v486_v7 = vld [vmem:[#allocation2] sm:$0xf] }
 0x170   : > { %v487_v8 = vadd.f32 %v486_v7, %v480_v56 }
 0x172   : > { %488 = vst.msk [vmem:[#allocation2] sm:$0xf] %vm266_vm3, %v487_v8 }
 0x173   : > { %v728_v9 = vpop.f32.mrb[16].mxu0 }
 0x174   : > { %v987_v10 = vpop.f32.mrb[17].mxu0 }
 0x175   : > { %v731_v11 = vpop.f32.mrb[18].mxu0 }
 0x176   : > { %v988_v12 = vpop.f32.mrb[19].mxu0 }
 0x179   : > { %v548_v13 = vld [vmem:[#allocation2] sm:$0xf] }
 0x17a   : > { %v549_v14 = vadd.f32 %v548_v13, %v542_v53 }
 0x17c   : > { %550 = vst.msk [vmem:[#allocation2] sm:$0xf] %vm266_vm3, %v549_v14 }
 0x183   : > { %v610_v15 = vld [vmem:[#allocation2] sm:$0xf] }
 0x184   : > { %v611_v16 = vadd.f32 %v610_v15, %v604_v2 }
 0x186   : > { %612 = vst.msk [vmem:[#allocation2] sm:$0xf] %vm266_vm3, %v611_v16 }
 0x18d   : > { %v672_v17 = vld [vmem:[#allocation2] sm:$0xf] }
 0x18e   : > { %v673_v18 = vadd.f32 %v672_v17, %v666_v63 }
 0x190   : > { %674 = vst.msk [vmem:[#allocation2] sm:$0xf] %vm266_vm3, %v673_v18 }
 0x197   : > { %v734_v19 = vld [vmem:[#allocation2] sm:$0xf] }
 0x198   : > { %v735_v20 = vadd.f32 %v734_v19, %v728_v9 }
 0x19a   : > { %736 = vst.msk [vmem:[#allocation2] sm:$0xf] %vm266_vm3, %v735_v20 }
 0x1a1   : > { %v737_v22 = vld [vmem:[#allocation2] sm:$0xf] }
 0x1a2   : > { %v744_v23 = vadd.f32 %v742_v21, %v737_v22 }
 0x1a4   : > { %v912_v24 = vmul.f32 -1.442695, %v744_v23 }
 0x1a6   : > { %1011 = vpow2.f32 %v912_v24 }
 0x1b0   : > { %v1012_v25 = vpop.eup %1011 }
 0x1b1   : > { %v748_v26 = vadd.f32 1.0, %v1012_v25 }
 0x1b3   : > { %1013 = vrcp.f32 %v748_v26 }
 0x1bd   : > { %v1014_v28 = vpop.eup %1013 }
 0x1be   : > { %v751_v29 = vmul.f32 %v1014_v28, %v744_v23 }
 0x1c0   : > { %752 = vst.msk [vmem:[#allocation2] sm:$0xf] %vm266_vm3, %v751_v29 }
 0x1c7   : > { %v763_v30 = vld [vmem:[#allocation2] sm:$0xf] }
 0x1c8   : > { %v756_v31 = vld [vmem:[#allocation2] sm:$0xf]  ;;  %765 = vrot.lane.b32.xlu1 %v763_v30, %s1029_s29 }
 0x1c9   : > { %758 = vrot.lane.b32.xlu0 %v756_v31, %s1025_s21  ;;  %v753_v32 = vld [vmem:[#allocation2] sm:$0xf]  ;;  %s1034_s21 = smov 121  }
 0x1ca   : > { %755 = vst.msk [vmem:[%s1180_s28] sm:$0xf] %vm754_vm5, %v753_v32  ;;  %v777_v33 = vld [vmem:[#allocation2] sm:$0xf] }
 0x1cb   : > { %v770_v34 = vld [vmem:[#allocation2] sm:$0xf] }
 0x1cc   : > { %779 = vrot.lane.b32.xlu1 %v777_v33, %s1030_s16  ;;  %v791_v35 = vld [vmem:[#allocation2] sm:$0xf] }
 0x1cd   : > { %772 = vrot.lane.b32.xlu0 %v770_v34, %s1031_s17  ;;  %v784_v36 = vld [vmem:[#allocation2] sm:$0xf] }
 0x1ce   : > { %v798_v37 = vld [vmem:[#allocation2] sm:$0xf] }
 0x1d0   : > { %793 = vrot.lane.b32.xlu1 %v791_v35, %s1032_s30 }
 0x1d1   : > { %786 = vrot.lane.b32.xlu0 %v784_v36, %s1033_s5 }
 0x1d5   : > { %800 = vrot.lane.b32.xlu0 %v798_v37, %s1034_s21 }
 0x23a   : > { %v766_v38 = vpop.permute.xlu1 %765 }
 0x23b   : > { %v759_v39 = vpop.permute.xlu0 %758 }
 0x23c   : > { %762 = vst.msk [vmem:[%s1180_s28] sm:$0xf] %vm761_vm6, %v759_v39 }
 0x23d   : > { %769 = vst.msk [vmem:[%s1180_s28] sm:$0xf] %vm768_vm7, %v766_v38 }
 0x23e   : > { %v780_v40 = vpop.permute.xlu1 %779 }
 0x23f   : > { %v773_v41 = vpop.permute.xlu0 %772 }
 0x240   : > { %776 = vst.msk [vmem:[%s1180_s28] sm:$0xf] %vm775_vm8, %v773_v41 }
 0x241   : > { %783 = vst.msk [vmem:[%s1180_s28] sm:$0xf] %vm782_vm9, %v780_v40 }
 0x242   : > { %v794_v42 = vpop.permute.xlu1 %793 }
 0x243   : > { %v787_v43 = vpop.permute.xlu0 %786 }
 0x244   : > { %790 = vst.msk [vmem:[%s1180_s28] sm:$0xf] %vm789_vm10, %v787_v43 }
 0x245   : > { %797 = vst.msk [vmem:[%s1180_s28] sm:$0xf] %vm796_vm11, %v794_v42 }
 0x247   : > { %v801_v44 = vpop.permute.xlu0 %800 }
 0x248   : > { %804 = vst.msk [vmem:[%s1180_s28] sm:$0xf] %vm803_vm12, %v801_v44 }
 0x249 PF: > { %s14_s15 = sadd.s32 1, %s1021_s15  }
 0x24a   : > { %p11_p4 = scmp.ge.s32.totalorder %s14_s15, 4  }
 0x24c   :  { %13 = sbr.rel (!%p11_p4) target bundleno = 1 (0x1), region = 80 }

</bundles_post_ra>
